<compile_context>
chip_gen: v7x
topology: tpu7x:2x2x1
jax: 0.10.0
libtpu: 0.0.40
codegen_flags: <defaults>
</compile_context>

<pallas_src>
import functools

import jax
import jax.numpy as jnp
from jax import lax
from jax.experimental import pallas as pl
from jax.experimental.pallas import tpu as pltpu


# Contract the last dim of x (tm, tk) with the last dim of w (tn, tk) -> (tm, tn),
# i.e. x @ w.T with the weight kept in PyTorch (out, in) layout.
_DOT_DIMS = (((1,), (1,)), ((), ()))


def _round_up(x: int, m: int) -> int:
    return ((x + m - 1) // m) * m


def _pick_multi_tile(dim: int, lo: int, hi: int, step: int):
    """Pick a tile in [lo, hi] (multiple of `step`) minimizing padding, prefer larger."""
    best_t, best_pad = None, None
    t = lo
    while t <= hi:
        pad = _round_up(dim, t)
        if best_pad is None or pad < best_pad or (pad == best_pad and t > best_t):
            best_t, best_pad = t, pad
        t += step
    return best_t, best_pad


def _kernel_single_k(x_ref, w_ref, o_ref):
    """One (tm, tn) output tile; whole K in a single block -> no accumulator."""
    o_ref[...] = lax.dot_general(
        x_ref[...], w_ref[...],
        dimension_numbers=_DOT_DIMS,
        preferred_element_type=jnp.float32,
    ).astype(o_ref.dtype)


def _kernel_multi_k(x_ref, w_ref, o_ref, acc_ref):
    """One (tm, tn) output tile; K split over the last ('arbitrary') grid axis."""
    @pl.when(pl.program_id(2) == 0)
    def _init():
        acc_ref[...] = jnp.zeros_like(acc_ref)

    acc_ref[...] += lax.dot_general(
        x_ref[...], w_ref[...],
        dimension_numbers=_DOT_DIMS,
        preferred_element_type=jnp.float32,
    )

    @pl.when(pl.program_id(2) == pl.num_programs(2) - 1)
    def _finalize():
        o_ref[...] = acc_ref[...].astype(o_ref.dtype)


@functools.partial(jax.jit, static_argnames=("compute_dtype",))
def my_linear(x: jax.Array, weight: jax.Array, *, compute_dtype=None) -> jax.Array:
    """Pallas implementation of myLinear.forward: x @ weight.T (no bias).

    x:      (..., input_features)
    weight: (output_features, input_features)   -- PyTorch convention
    returns (..., output_features), same dtype as x.
    """
    *lead, in_f = x.shape
    out_f, in_f_w = weight.shape
    assert in_f == in_f_w, "input_features mismatch"

    out_dtype = x.dtype
    x2 = x.reshape(-1, in_f)
    m = x2.shape[0]
    w = weight  # keep (out, in) layout -- no transpose copy in the hot path

    if compute_dtype is not None:
        x2 = x2.astype(compute_dtype)
        w = w.astype(compute_dtype)

    in_item = x2.dtype.itemsize
    out_item = jnp.dtype(out_dtype).itemsize
    # bf16 packs 2 rows per sublane -> split-M tiles must be multiples of 16.
    sub_align = 16 if in_item < 4 else 8

    M_CAP, N_CAP = 512, 512
    K_FULL_CAP, K_TILE_CAP = 1024, 512

    # --- K (contraction) ------------------------------------------------
    if in_f <= K_FULL_CAP:
        tk, k_pad = in_f, in_f          # one full-K block: no pad, no accumulator
    else:
        tk, k_pad = _pick_multi_tile(in_f, 128, K_TILE_CAP, 128)
    gk = k_pad // tk

    # --- M (rows) ---------------------------------------------------------
    if m <= M_CAP:
        tm, m_pad = m, m                # full-dim block is legal even if m % 8 != 0
    else:
        tm, m_pad = _pick_multi_tile(m, 128, M_CAP, sub_align)

    # --- N (output features) ----------------------------------------------
    if out_f <= N_CAP:
        tn, n_pad = out_f, out_f
    else:
        tn, n_pad = _pick_multi_tile(out_f, 128, N_CAP, 128)

    # v7x has 2 TensorCores: ensure >=2 blocks along a parallel axis when we
    # can do so without introducing padding (no effect on single-TC v5e/v6e).
    if m_pad // tm == 1 and n_pad // tn == 1:
        if m <= M_CAP and m >= 2 * sub_align and m % (2 * sub_align) == 0:
            tm = m // 2
        elif out_f <= N_CAP and out_f >= 256 and out_f % 256 == 0:
            tn = out_f // 2

    # Zero-padding only when a split dimension is not an exact multiple.
    if m_pad != m or k_pad != in_f:
        x2 = jnp.pad(x2, ((0, m_pad - m), (0, k_pad - in_f)))
    if n_pad != out_f or k_pad != in_f:
        w = jnp.pad(w, ((0, n_pad - out_f), (0, k_pad - in_f)))

    gm, gn = m_pad // tm, n_pad // tn

    # Advisory cost estimate reflecting actual re-reads.
    flops = 2 * m_pad * k_pad * n_pad
    bytes_accessed = (
        m_pad * k_pad * in_item * gn        # x re-read for every N tile
        + n_pad * k_pad * in_item * gm      # w re-read for every M tile
        + m_pad * n_pad * out_item          # output written once
    )

    # Working set: double-buffered inputs + double-buffered output (+ f32 acc).
    vmem_est = 2 * (tm + tn) * tk * in_item + 2 * tm * tn * out_item
    if gk > 1:
        vmem_est += tm * tn * 4
    vmem_limit = int(min(max(2 * vmem_est, 32 * 1024 * 1024), 56 * 1024 * 1024))

    common = dict(
        out_shape=jax.ShapeDtypeStruct((m_pad, n_pad), out_dtype),
        cost_estimate=pl.CostEstimate(
            flops=flops, bytes_accessed=bytes_accessed, transcendentals=0
        ),
    )

    if gk == 1:
        out = pl.pallas_call(
            _kernel_single_k,
            grid=(gm, gn),
            in_specs=[
                pl.BlockSpec((tm, tk), lambda i, j: (i, 0)),
                pl.BlockSpec((tn, tk), lambda i, j: (j, 0)),
            ],
            out_specs=pl.BlockSpec((tm, tn), lambda i, j: (i, j)),
            compiler_params=pltpu.CompilerParams(
                dimension_semantics=("parallel", "parallel"),
                vmem_limit_bytes=vmem_limit,
            ),
            **common,
        )(x2, w)
    else:
        out = pl.pallas_call(
            _kernel_multi_k,
            grid=(gm, gn, gk),
            in_specs=[
                pl.BlockSpec((tm, tk), lambda i, j, k: (i, k)),
                pl.BlockSpec((tn, tk), lambda i, j, k: (j, k)),
            ],
            out_specs=pl.BlockSpec((tm, tn), lambda i, j, k: (i, j)),
            scratch_shapes=[pltpu.VMEM((tm, tn), jnp.float32)],
            compiler_params=pltpu.CompilerParams(
                dimension_semantics=("parallel", "parallel", "arbitrary"),
                vmem_limit_bytes=vmem_limit,
            ),
            **common,
        )(x2, w)

    out = out[:m, :out_f]
    return out.reshape(*lead, out_f)


if __name__ == "__main__":
    key = jax.random.PRNGKey(0)
    k_x, k_w, k_x2, k_w2, k_x3, k_w3 = jax.random.split(key, 6)
    HIGHEST = jax.lax.Precision.HIGHEST

    # 1) Small shapes consistent with the module: batch=8, in=32, out=16.
    batch, input_features, output_features = 8, 32, 16
    x = jax.random.normal(k_x, (batch, input_features), dtype=jnp.float32)
    # Matches torch: self.weight.data.uniform_(-0.1, 0.1), shape (out, in).
    weight = jax.random.uniform(
        k_w, (output_features, input_features),
        minval=-0.1, maxval=0.1, dtype=jnp.float32,
    )
    out = jax.block_until_ready(my_linear(x, weight))
    ref = jnp.matmul(x, weight.T, precision=HIGHEST)
    assert out.shape == (batch, output_features)
    assert jnp.allclose(out, ref, atol=1e-5, rtol=1e-5)

    # 2) MNIST-hidden-layer shape: single full-K block (no pad, no transpose),
    #    M split into two parallel blocks.
    b2, in2, out2 = 64, 784, 128
    x2 = jax.random.normal(k_x2, (b2, in2), dtype=jnp.float32)
    w2 = jax.random.uniform(k_w2, (out2, in2), minval=-0.1, maxval=0.1,
                            dtype=jnp.float32)
    y2 = jax.block_until_ready(my_linear(x2, w2))
    ref2 = jnp.matmul(x2, w2.T, precision=HIGHEST)
    assert y2.shape == (b2, out2)
    assert jnp.allclose(y2, ref2, atol=1e-4, rtol=1e-4)

    # 3) Wide-K shape exercising the multi-step K accumulation kernel.
    b3, in3, out3 = 32, 2048, 256
    x3 = jax.random.normal(k_x3, (b3, in3), dtype=jnp.float32)
    w3 = jax.random.uniform(k_w3, (out3, in3), minval=-0.1, maxval=0.1,
                            dtype=jnp.float32)
    y3 = jax.block_until_ready(my_linear(x3, w3))
    ref3 = jnp.matmul(x3, w3.T, precision=HIGHEST)
    assert y3.shape == (b3, out3)
    assert jnp.allclose(y3, ref3, atol=1e-3, rtol=1e-3)

    print("KERNEL_OK")
</pallas_src>

<mosaic_0001>
module attributes {stable_mosaic.version = 11 : i64} {
  func.func @_kernel_single_k(%arg0: i32, %arg1: i32, %arg2: memref<8x32xf32, #tpu.memory_space<vmem>>, %arg3: memref<16x32xf32, #tpu.memory_space<vmem>>, %arg4: memref<8x16xf32, #tpu.memory_space<vmem>>) attributes {dimension_semantics = [#tpu.dimension_semantics<parallel>, #tpu.dimension_semantics<parallel>], iteration_bounds = array<i64: 1, 1>, scalar_prefetch = 0 : i64, scratch_operands = 0 : i64, tpu.core_type = #tpu.core_type<tc>, window_params = [{transform_indices = @transform_0, window_bounds = array<i64: 8, 32>}, {transform_indices = @transform_1, window_bounds = array<i64: 16, 32>}, {transform_indices = @transform_2, window_bounds = array<i64: 8, 16>}]} {
    %c0 = arith.constant 0 : index
    %c0_0 = arith.constant 0 : index
    %0 = vector.load %arg2[%c0, %c0_0] : memref<8x32xf32, #tpu.memory_space<vmem>>, vector<8x32xf32>
    %c0_1 = arith.constant 0 : index
    %c0_2 = arith.constant 0 : index
    %1 = vector.load %arg3[%c0_1, %c0_2] : memref<16x32xf32, #tpu.memory_space<vmem>>, vector<16x32xf32>
    %cst = arith.constant dense<0.000000e+00> : vector<8x16xf32>
    %2 = tpu.matmul %0, %1, %cst {dimension_numbers = #tpu.dot_dimension_numbers<[1], [1], [0], [0], [0, 0, 1, 0], [], []>} : vector<8x32xf32>, vector<16x32xf32>, vector<8x16xf32> -> vector<8x16xf32>
    %c0_3 = arith.constant 0 : index
    %c0_4 = arith.constant 0 : index
    %3 = vector.load %arg4[%c0_3, %c0_4] : memref<8x16xf32, #tpu.memory_space<vmem>>, vector<8x16xf32>
    tpu.vector_store %arg4[%c0_3, %c0_4], %2 {strides = array<i32>} : memref<8x16xf32, #tpu.memory_space<vmem>>, vector<8x16xf32>,
    return
  }
  func.func @transform_0(%arg0: i32, %arg1: i32) -> (i32, i32) {
    %c0_i32 = arith.constant 0 : i32
    %c0_i32_0 = arith.constant 0 : i32
    return %arg0, %c0_i32 : i32, i32
  }
  func.func @transform_1(%arg0: i32, %arg1: i32) -> (i32, i32) {
    %c0_i32 = arith.constant 0 : i32
    %c0_i32_0 = arith.constant 0 : i32
    return %arg1, %c0_i32 : i32, i32
  }
  func.func @transform_2(%arg0: i32, %arg1: i32) -> (i32, i32) {
    %c0_i32 = arith.constant 0 : i32
    return %arg0, %arg1 : i32, i32
  }
}

</mosaic_0001>

<bundles_post_ra>
// kernel: my_linear.1
= control target key start
LH: loop header
LB: loop body
LE: loop exit
PB: predicated region body
PF: predicated region fallthrough
CT: control target
= control target key end

     0   :  { %7 = vsyncpa [#allocation3], 0  ;;  %s302_s0 = inlined_call_operand.hbm [shape: f32[8,32], index: 0, kind: input, shape index: {}]   ;;  %s303_s1 = inlined_call_operand.hbm [shape: f32[16,32], index: 1, kind: input, shape index: {}]   ;;  %s304_s2 = inlined_call_operand.hbm [shape: f32[8,16], index: 2, kind: output, shape index: {}]  }
   0x1   :  { %8 = vsyncpa [#allocation6], 0 }
   0x2   :  { %9 = vsyncpa [#allocation4], 0  ;;  %s236_s9 = smov [#allocation2]   ;;  %s237_s11 = smov [#allocation5]  }
   0x3   :  { %s16_s10 = sshll.u32 %s236_s9, 4  ;;  %s25_s12 = sshll.u32 %s237_s11, 4  ;;  %s17_s10 = int_to_ptr.vmem [resolvable:$true] %s16_s10  ;;  %s259_s12 = int_to_ptr.vmem [resolvable:$true] %s25_s12 }
   0x4   :  { %s164_s15 = scalar_lea.hbm %s302_s0, 128 }
   0x5   :  { %p165_p0 = scmp.ne.s32.totalorder %s302_s0, %s164_s15  ;;  %p168_p1 = scmp.lt.u32.totalorder %s164_s15, %s302_s0 }
   0x7   :  { %p170_p2 = pnand %p168_p1, %p165_p0 }
   0x9   :  { %173 = shalt.err (!%p170_p2)
}
   0xa   :  { %s174_s20 = scalar_lea.vmem %s17_s10, 128  ;;  %p179_p4 = scmp.lt.s32.totalorder %s17_s10, %s17_s10 }
   0xb   :  { %p175_p3 = scmp.ne.s32.totalorder %s17_s10, %s174_s20  ;;  %p180_p5 = scmp.lt.s32.totalorder %s174_s20, %s174_s20 }
   0xd   :  { %p181_p6 = por %p180_p5, %p179_p4 }
   0xf   :  { %p182_p7 = pnand %p181_p6, %p175_p3 }
  0x11   :  { %185 = shalt.err (!%p182_p7)
}
  0x12   :  { %19 = dma.hbm_to_vmem [thread:$0]  %s302_s0, 128, %s17_s10, [#allocation3]  }
  0x13   :  { %s186_s25 = scalar_lea.hbm %s303_s1, 256 }
  0x14   :  { %p187_p8 = scmp.ne.s32.totalorder %s303_s1, %s186_s25  ;;  %p190_p9 = scmp.lt.u32.totalorder %s186_s25, %s303_s1 }
  0x16   :  { %p192_p10 = pnand %p190_p9, %p187_p8 }
  0x18   :  { %195 = shalt.err (!%p192_p10)
}
  0x19   :  { %s196_s30 = scalar_lea.vmem %s259_s12, 256  ;;  %p201_p12 = scmp.lt.s32.totalorder %s259_s12, %s259_s12 }
  0x1a   :  { %p197_p11 = scmp.ne.s32.totalorder %s259_s12, %s196_s30  ;;  %p202_p13 = scmp.lt.s32.totalorder %s196_s30, %s196_s30 }
  0x1c   :  { %p203_p0 = por %p202_p13, %p201_p12 }
  0x1e   :  { %p204_p1 = pnand %p203_p0, %p197_p11 }
  0x20   :  { %207 = shalt.err (!%p204_p1)
}
  0x21   :  { %s238_s0 = smov 128   ;;  %s239_s3 = smov 8  }
  0x22   :  { %31 = dma.hbm_to_vmem [thread:$0]  %s303_s1, 256, %s259_s12, [#allocation6], %s238_s0, %s238_s0, %s239_s3  }
  0x23   :  { %230 = dma.done.wait [#allocation3], 128  }
  0x24   :  { %231 = vsyncadd [#allocation3], 4294967168 }
  0x25   :  { %232 = dma.done.wait [#allocation6], 256  }
  0x26   :  { %233 = vsyncadd [#allocation6], 4294967040  ;;  %v240_v0 = vmov 0.0|0.0   ;;  %vm241_vm0 = vmmov 0   ;;  %v242_v1 = vmov 0.0   ;;  %vm41_vm1 = vcmask 261120  }
  0x27   :  { %152 = vmatprep.subr.bf16.mxu0 %v240_v0  ;;  %149 = vmatprep.mubr.msk.f32.mxu0 %vm241_vm0, %v242_v1  ;;  %v39_v2 = vld [vmem:[#allocation5] sm:$0xff]  ;;  %v40_v3 = vld [vmem:[#allocation5 + $0x8] sm:$0xff]  ;;  %vm154_vm2 = vmpackc.low %vm41_vm1, %vm41_vm1  ;;  %s243_s6 = smov [#allocation7]   ;;  %vm121_vm3 = vcmask 130048  }
  0x28   :  { %v153_v4 = vpack.c.bf16 %v40_v3, %v39_v2  ;;  %v38_v5 = vld [vmem:[#allocation2] sm:$0xff]  ;;  %s129_s7 = sshll.u32 %s243_s6, 4  ;;  %s130_s7 = int_to_ptr.vmem [resolvable:$true] %s129_s7 }
  0x29   :  { %s208_s1 = scalar_lea.vmem %s130_s7, 128  ;;  %p213_p3 = scmp.lt.s32.totalorder %s130_s7, %s130_s7 }
  0x2a   :  { %155 = vmatpush3.bf16.xpose.msk.msra.mxu0 %vm154_vm2, %v153_v4  ;;  %p209_p2 = scmp.ne.s32.totalorder %s130_s7, %s208_s1  ;;  %p214_p4 = scmp.lt.s32.totalorder %s208_s1, %s208_s1 }
  0x2c   :  { %p215_p5 = por %p214_p4, %p213_p3 }
  0x2e   :  { %p216_p6 = pnand %p215_p5, %p209_p2 }
  0x31   :  { %150 = vmatmul.mubr.msk.f32.vlgmr.msra.gmra.mrb[0].mxu0 %vm41_vm1, %v38_v5 }
 0x104   :  { %v117_v6 = vpop.f32.mrb[0].mxu0 }
 0x105   :  { %v151_v7 = vpop.f32.mrb[1].mxu0  ;;  %122 = vst.msk [vmem:[#allocation7] sm:$0xff] %vm121_vm3, %v117_v6 }
 0x106   :  { %219 = shalt.err (!%p216_p6)
}
 0x107   :  { %s220_s10 = scalar_lea.hbm %s304_s2, 128 }
 0x108   :  { %p221_p7 = scmp.ne.s32.totalorder %s304_s2, %s220_s10  ;;  %p224_p8 = scmp.lt.u32.totalorder %s220_s10, %s304_s2 }
 0x10a   :  { %p226_p9 = pnand %p224_p8, %p221_p7 }
 0x10c   :  { %229 = shalt.err (!%p226_p9)
}
 0x10d   :  { %132 = dma.vmem_to_hbm [thread:$0]  %s130_s7, 128, %s304_s2, [#allocation4]  }
 0x10e   :  { %234 = dma.done.wait [#allocation4], 128  }
 0x10f   :  { %235 = vsyncadd [#allocation4], 4294967168 }
 0x110   :  { %136 = vsyncpa [#allocation3], 1 }
 0x111   :  { %137 = vsyncpa [#allocation6], 1 }
 0x112   :  { %138 = vsyncpa [#allocation4], 1 }

</bundles_post_ra>
